<compile_context>
chip_gen: v7x
topology: tpu7x:2x2x1
jax: 0.10.0
libtpu: 0.0.40
codegen_flags: <defaults>
</compile_context>

<pallas_src>
import jax
import jax.numpy as jnp
from jax import lax
from jax.experimental import pallas as pl
from jax.experimental.pallas import tpu as pltpu


def _round_up(n, m):
    return ((n + m - 1) // m) * m


def _mlp_kernel(x_ref, w1_ref, w2_ref, w3_ref, o_ref):
    x_t = x_ref[...]                     # (I, tb)   batch on lanes
    w1 = w1_ref[...]                     # (H1, I)   native (out, in)

    # Layer 1: K = I = 4 is too small for the MXU -> 4 broadcast VPU FMAs.
    # x_t rows broadcast over sublanes (cheap); w1 columns broadcast over lanes.
    h1 = w1[:, 0:1] * x_t[0:1, :]        # (H1, tb)
    for k in range(1, w1.shape[1]):
        h1 = h1 + w1[:, k:k + 1] * x_t[k:k + 1, :]
    # dropout1: eval-mode identity
    h1 = jnp.maximum(h1, 0.0)

    # Layer 2: (H2_out, H2_in) x (H2_in, tb) -> (H2_out, tb) on the MXU,
    # f32 accumulation, full lane width on the result.
    h2 = lax.dot_general(
        w2_ref[...], h1,
        dimension_numbers=(((1,), (0,)), ((), ())),
        preferred_element_type=jnp.float32)
    # dropout2: eval-mode identity
    h2 = jnp.maximum(h2, 0.0)

    # Head: (O, H2) x (H2, tb) -> (O, tb) -- lane-dense output block,
    # no in-kernel transpose and no narrow masked stores.
    o_ref[...] = lax.dot_general(
        w3_ref[...], h2,
        dimension_numbers=(((1,), (0,)), ((), ())),
        preferred_element_type=jnp.float32)


def mlp_forward(x, w1, w2, w3, *, tb=None, batch_major_output=True):
    """x: (B, I) float32.  w1: (64, I), w2: (64, 64), w3: (O, 64), all in the
    native PyTorch nn.Linear (out_features, in_features) layout.

    Returns (B, O) float32.  Consumers that can accept the kernel-native
    lane-dense (O, B) slab should pass batch_major_output=False to skip the
    wrapper-side transpose (an extra HBM read+write pass)."""
    B, I = x.shape
    H1 = w1.shape[0]
    H2 = w2.shape[0]
    O = w3.shape[0]
    assert w1.shape == (H1, I) and w2.shape == (H2, H1) and w3.shape == (O, H2)

    # Tile selection: lane-dense tiles (multiple of 128) and at most ~2 grid
    # steps.  Two parallel steps feed both v7x TensorCores; on single-TC parts
    # 1-2 steps keeps pipeline overhead (~0.35 us/step) negligible.  Rows are
    # independent, so zero-padding the batch is exact.
    B128 = _round_up(B, 128)
    if tb is None:
        tb = _round_up(-(-B128 // 2), 128) if B128 >= 256 else B128
    else:
        tb = min(_round_up(tb, 128), B128)
    Bp = _round_up(B, tb)

    x_t = x.T                                        # (I, B): batch on lanes
    if Bp != B:
        x_t = jnp.pad(x_t, ((0, 0), (0, Bp - B)))

    out_t = pl.pallas_call(
        _mlp_kernel,
        out_shape=jax.ShapeDtypeStruct((O, Bp), jnp.float32),
        grid=(Bp // tb,),
        in_specs=[
            pl.BlockSpec((I, tb), lambda i: (0, i)),     # x: batch-tiled
            pl.BlockSpec((H1, I), lambda i: (0, 0)),     # weights stay
            pl.BlockSpec((H2, H1), lambda i: (0, 0)),    #   VMEM-resident
            pl.BlockSpec((O, H2), lambda i: (0, 0)),
        ],
        out_specs=pl.BlockSpec((O, tb), lambda i: (0, i)),
        compiler_params=pltpu.CompilerParams(
            dimension_semantics=("parallel",)),
    )(x_t, w1, w2, w3)

    out_t = out_t[:, :B]                               # (O, B)
    if batch_major_output:
        return out_t.T                                 # (B, O)
    return out_t


def reference_forward(x, w1, w2, w3):
    h = jnp.maximum(x @ w1.T, 0.0)
    h = jnp.maximum(h @ w2.T, 0.0)
    return h @ w3.T


if __name__ == "__main__":
    input_size, hidden, output_size = 4, 64, 2
    batch = 256   # small rollout buffer of states; wrapper pads any batch

    key = jax.random.PRNGKey(0)
    kx, k1, k2, k3 = jax.random.split(key, 4)

    # Deterministic init mimicking nn.Linear's U(-1/sqrt(in), 1/sqrt(in)),
    # kept in the native PyTorch (out_features, in_features) layout.
    def init_linear(k, fan_in, fan_out):
        bound = 1.0 / float(fan_in) ** 0.5
        return jax.random.uniform(k, (fan_out, fan_in), jnp.float32,
                                  minval=-bound, maxval=bound)

    w1 = init_linear(k1, input_size, hidden)          # (64, 4)
    w2 = init_linear(k2, hidden, hidden)              # (64, 64)
    w3 = init_linear(k3, hidden, output_size)         # (2, 64)

    x = jax.random.normal(kx, (batch, input_size), jnp.float32)

    out = jax.block_until_ready(mlp_forward(x, w1, w2, w3))
    ref = reference_forward(x, w1, w2, w3)

    assert out.shape == (batch, output_size)
    assert jnp.allclose(out, ref, atol=1e-4, rtol=1e-4), "mismatch vs reference"

    print("KERNEL_OK")
</pallas_src>

<mosaic_0001>
module attributes {stable_mosaic.version = 11 : i64} {
  func.func @_mlp_kernel(%arg0: i32, %arg1: memref<4x128xf32, #tpu.memory_space<vmem>>, %arg2: memref<64x4xf32, #tpu.memory_space<vmem>>, %arg3: memref<64x64xf32, #tpu.memory_space<vmem>>, %arg4: memref<2x64xf32, #tpu.memory_space<vmem>>, %arg5: memref<2x128xf32, #tpu.memory_space<vmem>>) attributes {dimension_semantics = [#tpu.dimension_semantics<parallel>], iteration_bounds = array<i64: 2>, scalar_prefetch = 0 : i64, scratch_operands = 0 : i64, tpu.core_type = #tpu.core_type<tc>, window_params = [{transform_indices = @transform_0, window_bounds = array<i64: 4, 128>}, {pipeline_mode = #tpu.pipeline_mode<synchronous>, transform_indices = @transform_1, window_bounds = array<i64: 64, 4>}, {pipeline_mode = #tpu.pipeline_mode<synchronous>, transform_indices = @transform_2, window_bounds = array<i64: 64, 64>}, {pipeline_mode = #tpu.pipeline_mode<synchronous>, transform_indices = @transform_3, window_bounds = array<i64: 2, 64>}, {transform_indices = @transform_4, window_bounds = array<i64: 2, 128>}]} {
    %c0 = arith.constant 0 : index
    %c0_0 = arith.constant 0 : index
    %0 = vector.load %arg1[%c0, %c0_0] : memref<4x128xf32, #tpu.memory_space<vmem>>, vector<4x128xf32>
    %c0_1 = arith.constant 0 : index
    %c0_2 = arith.constant 0 : index
    %1 = vector.load %arg2[%c0_1, %c0_2] : memref<64x4xf32, #tpu.memory_space<vmem>>, vector<64x4xf32>
    %2 = vector.extract_strided_slice %1 {offsets = [0, 0], sizes = [64, 1], strides = [1, 1]} : vector<64x4xf32> to vector<64x1xf32>
    %3 = vector.extract_strided_slice %0 {offsets = [0, 0], sizes = [1, 128], strides = [1, 1]} : vector<4x128xf32> to vector<1x128xf32>
    %4 = vector.broadcast %2 : vector<64x1xf32> to vector<64x128xf32>
    %5 = vector.broadcast %3 : vector<1x128xf32> to vector<64x128xf32>
    %6 = arith.mulf %4, %5 : vector<64x128xf32>
    %7 = vector.extract_strided_slice %1 {offsets = [0, 1], sizes = [64, 1], strides = [1, 1]} : vector<64x4xf32> to vector<64x1xf32>
    %8 = vector.extract_strided_slice %0 {offsets = [1, 0], sizes = [1, 128], strides = [1, 1]} : vector<4x128xf32> to vector<1x128xf32>
    %9 = vector.broadcast %7 : vector<64x1xf32> to vector<64x128xf32>
    %10 = vector.broadcast %8 : vector<1x128xf32> to vector<64x128xf32>
    %11 = arith.mulf %9, %10 : vector<64x128xf32>
    %12 = arith.addf %6, %11 : vector<64x128xf32>
    %13 = vector.extract_strided_slice %1 {offsets = [0, 2], sizes = [64, 1], strides = [1, 1]} : vector<64x4xf32> to vector<64x1xf32>
    %14 = vector.extract_strided_slice %0 {offsets = [2, 0], sizes = [1, 128], strides = [1, 1]} : vector<4x128xf32> to vector<1x128xf32>
    %15 = vector.broadcast %13 : vector<64x1xf32> to vector<64x128xf32>
    %16 = vector.broadcast %14 : vector<1x128xf32> to vector<64x128xf32>
    %17 = arith.mulf %15, %16 : vector<64x128xf32>
    %18 = arith.addf %12, %17 : vector<64x128xf32>
    %19 = vector.extract_strided_slice %1 {offsets = [0, 3], sizes = [64, 1], strides = [1, 1]} : vector<64x4xf32> to vector<64x1xf32>
    %20 = vector.extract_strided_slice %0 {offsets = [3, 0], sizes = [1, 128], strides = [1, 1]} : vector<4x128xf32> to vector<1x128xf32>
    %21 = vector.broadcast %19 : vector<64x1xf32> to vector<64x128xf32>
    %22 = vector.broadcast %20 : vector<1x128xf32> to vector<64x128xf32>
    %23 = arith.mulf %21, %22 : vector<64x128xf32>
    %24 = arith.addf %18, %23 : vector<64x128xf32>
    %cst = arith.constant 0.000000e+00 : f32
    %25 = vector.broadcast %cst : f32 to vector<64x128xf32>
    %26 = arith.maximumf %24, %25 : vector<64x128xf32>
    %c0_3 = arith.constant 0 : index
    %c0_4 = arith.constant 0 : index
    %27 = vector.load %arg3[%c0_3, %c0_4] : memref<64x64xf32, #tpu.memory_space<vmem>>, vector<64x64xf32>
    %cst_5 = arith.constant dense<0.000000e+00> : vector<64x128xf32>
    %28 = tpu.matmul %27, %26, %cst_5 {dimension_numbers = #tpu.dot_dimension_numbers<[1], [0], [0], [1], [0, 0, 1, 1], [], []>} : vector<64x64xf32>, vector<64x128xf32>, vector<64x128xf32> -> vector<64x128xf32>
    %cst_6 = arith.constant 0.000000e+00 : f32
    %29 = vector.broadcast %cst_6 : f32 to vector<64x128xf32>
    %30 = arith.maximumf %28, %29 : vector<64x128xf32>
    %c0_7 = arith.constant 0 : index
    %c0_8 = arith.constant 0 : index
    %31 = vector.load %arg4[%c0_7, %c0_8] : memref<2x64xf32, #tpu.memory_space<vmem>>, vector<2x64xf32>
    %cst_9 = arith.constant dense<0.000000e+00> : vector<2x128xf32>
    %32 = tpu.matmul %31, %30, %cst_9 {dimension_numbers = #tpu.dot_dimension_numbers<[1], [0], [0], [1], [0, 0, 1, 1], [], []>} : vector<2x64xf32>, vector<64x128xf32>, vector<2x128xf32> -> vector<2x128xf32>
    %c0_10 = arith.constant 0 : index
    %c0_11 = arith.constant 0 : index
    %33 = vector.load %arg5[%c0_10, %c0_11] : memref<2x128xf32, #tpu.memory_space<vmem>>, vector<2x128xf32>
    tpu.vector_store %arg5[%c0_10, %c0_11], %32 {strides = array<i32>} : memref<2x128xf32, #tpu.memory_space<vmem>>, vector<2x128xf32>,
    return
  }
  func.func @transform_0(%arg0: i32) -> (i32, i32) {
    %c0_i32 = arith.constant 0 : i32
    %c0_i32_0 = arith.constant 0 : i32
    return %c0_i32, %arg0 : i32, i32
  }
  func.func @transform_1(%arg0: i32) -> (i32, i32) {
    %c0_i32 = arith.constant 0 : i32
    %c0_i32_0 = arith.constant 0 : i32
    %c0_i32_1 = arith.constant 0 : i32
    return %c0_i32, %c0_i32_0 : i32, i32
  }
  func.func @transform_2(%arg0: i32) -> (i32, i32) {
    %c0_i32 = arith.constant 0 : i32
    %c0_i32_0 = arith.constant 0 : i32
    %c0_i32_1 = arith.constant 0 : i32
    return %c0_i32, %c0_i32_0 : i32, i32
  }
  func.func @transform_3(%arg0: i32) -> (i32, i32) {
    %c0_i32 = arith.constant 0 : i32
    %c0_i32_0 = arith.constant 0 : i32
    %c0_i32_1 = arith.constant 0 : i32
    return %c0_i32, %c0_i32_0 : i32, i32
  }
  func.func @transform_4(%arg0: i32) -> (i32, i32) {
    %c0_i32 = arith.constant 0 : i32
    %c0_i32_0 = arith.constant 0 : i32
    return %c0_i32, %arg0 : i32, i32
  }
}

</mosaic_0001>

<bundles_post_ra>
// kernel: tpu_custom_call.1
= control target key start
LH: loop header
LB: loop body
LE: loop exit
PB: predicated region body
PF: predicated region fallthrough
CT: control target
= control target key end

     0   :  { %9 = vsyncpa [#allocation3], 0  ;;  %s1200_s0 = inlined_call_operand.vmem [shape: f32[4,256], index: 0, kind: input, shape index: {}]   ;;  %s1201_s1 = inlined_call_operand.vmem [shape: f32[64,4], index: 1, kind: input, shape index: {}]   ;;  %s1202_s2 = inlined_call_operand.vmem [shape: f32[64,64], index: 2, kind: input, shape index: {}]   ;;  %s1203_s3 = inlined_call_operand.vmem [shape: f32[2,64], index: 3, kind: input, shape index: {}]   ;;  %s1204_s4 = inlined_call_operand.hbm [shape: f32[2,256], index: 4, kind: output, shape index: {}]  }
   0x1   :  { %11 = vsyncpa [#allocation3 + $0x1], 0  ;;  %s994_s15 = smov 0   ;;  %s996_s16 = smov 0  }
   0x2   :  { %s998_s17 = smov 0   ;;  %s1000_s18 = smov 0  }
   0x3 LB: > { %s1015_s19 = sadd.s32 4294967295, %s959_s18   ;;  %s712_s20 = sadd.s32 4294967294, %s959_s18   ;;  %s959_s18 = sphi %s1000_s18, %s1210_s18   ;;  %s955_s17 = sphi %s998_s17, %s1209_s17   ;;  %s951_s16 = sphi %s996_s16, %s1208_s16   ;;  %s947_s15 = sphi %s994_s15, %s1207_s15  }
   0x4   : > { %s1019_s21 = sadd.s32 1, %s959_s18   ;;  %s113_s22 = sadd.s32 1, %s955_s17 }
   0x5   : > { %s110_s23 = ssub.s32 %s959_s18, %s1019_s21  ;;  %p123_p0 = scmp.ne.s32.totalorder %s955_s17, %s951_s16 }
   0x6   : > { %p111_p1 = scmp.eq.s32.totalorder %s110_s23, 0  ;;  %p124_p2 = scmp.eq.s32.totalorder %s1015_s19, 1 }
   0x7   : > { %p129_p3 = scmp.ne.s32.totalorder %s951_s16, %s947_s15  ;;  %p130_p4 = scmp.eq.s32.totalorder %s712_s20, 1 }
   0x8   : > { %s1030_s24 = scalar_select %p111_p1, %s955_s17, %s113_s22  }
   0x9   : > { %p1032_p5 = por %p124_p2, %p123_p0  ;;  %p1036_p6 = por %p130_p4, %p129_p3 }
   0xa   : > { %p715_p7 = scmp.ge.s32.totalorder %s959_s18, 1  ;;  %p164_p8 = scmp.lt.s32.totalorder %s959_s18, 3 }
   0xc   : > { %p165_p9 = pnand %p715_p7, %p164_p8 }
   0xd   : > { %v194_v0 = vld [vmem:[%s1201_s1] sm:$0xff] (!%p165_p9)  ;;  %v961_v1 = vmov (!%p165_p9), 3   ;;  %v962_v2 = vmov (!%p165_p9), 1   ;;  %v197_v3 = vld [vmem:[%s1201_s1 + $0x18] sm:$0xff] (!%p165_p9)  ;;  %v195_v4 = vld [vmem:[%s1201_s1 + $0x8] sm:$0xff] (!%p165_p9)  ;;  %v963_v5 = vmov (!%p165_p9), 0   ;;  %v242_v21 = vlaneseq (!%p165_p9) }
   0xe   : > { %168 = sbr.rel (%p165_p9) target bundleno = 703 (0x2bf), region = 36  ;;  %881 = vset.pattern.permute.xlu0 (!%p165_p9), %v961_v1  ;;  %877 = vset.pattern.permute.xlu1 (!%p165_p9), %v962_v2  ;;  %v964_v6 = vmov (!%p165_p9), 2   ;;  %v196_v7 = vld [vmem:[%s1201_s1 + $0x10] sm:$0xff] (!%p165_p9)  ;;  %v198_v9 = vld [vmem:[%s1201_s1 + $0x20] sm:$0xff] (!%p165_p9)  ;;  %v201_v10 = vld [vmem:[%s1201_s1 + $0x38] sm:$0xff] (!%p165_p9)  ;;  %vm426_vm0 = vcmask (!%p165_p9), 523264  }
   0xf   : > { %359 = vperm.xlu0 (!%p165_p9), %881, %v194_v0   ;;  %255 = vperm.xlu1 (!%p165_p9), %877, %v194_v0   ;;  %v200_v8 = vld [vmem:[%s1201_s1 + $0x30] sm:$0xff] (!%p165_p9)  ;;  %v199_v11 = vld [vmem:[%s1201_s1 + $0x28] sm:$0xff] (!%p165_p9)  ;;  %v418_v12 = vld [vmem:[%s1202_s2] sm:$0xff] (!%p165_p9)  ;;  %p189_p10 = scmp.lt.s32.totalorder (!%p165_p9), %s1015_s19, 1  ;;  %v243_v24 = vshrl.u32 (!%p165_p9), %v242_v21, 7  ;;  %vm966_vm1 = vmmov (!%p165_p9), 0  }
  0x10   : > { %772 = vmatprep.mubr.msk.f32.mxu0 (!%p165_p9), %vm426_vm0, %v418_v12  ;;  %s728_s10 = sshll.u32 (!%p165_p9), %s1015_s19, 5 }
  0x11   : > { %v244_v26 = vsub.s32 (!%p165_p9), 0, %v243_v24  ;;  %v288_v28 = vsub.s32 (!%p165_p9), 1, %v243_v24  ;;  %v392_v30 = vsub.s32 (!%p165_p9), 3, %v243_v24  ;;  %v340_v32 = vsub.s32 (!%p165_p9), 2, %v243_v24  ;;  %s1160_s13 = scalar_lea.hbm (!%p165_p9), %s1204_s4, %s728_s10 }
  0x13   : > { %371 = vperm.xlu0 (!%p165_p9), %881, %v197_v3   ;;  %259 = vperm.xlu1 (!%p165_p9), %877, %v195_v4  }
  0x15   : > { %s190_s28 = scalar_select %p189_p10, %s1015_s19, 1 }
  0x16   : > { %s968_s19 = smov [#allocation2]  }
  0x17   : > { %887 = vset.pattern.permute.xlu0 %v963_v5  ;;  %878 = vset.pattern.permute.xlu1 %v964_v6  ;;  %s717_s29 = sshll.u32 %s190_s28, 2  ;;  %s901_s22 = sshll.u32 %s968_s19, 4  ;;  %s902_s22 = int_to_ptr.vmem [resolvable:$false] %s901_s22 }
  0x18   : > { %204 = vperm.xlu0 %887, %v194_v0   ;;  %311 = vperm.xlu1 %878, %v195_v4   ;;  %s192_s6 = scalar_lea.vmem %s1200_s0, %s717_s29  ;;  %s903_s23 = scalar_lea.vmem %s902_s22, 64 }
  0x19   : > { %v193_v29 = vld [vmem:[%s192_s6] sm:$0xf]  ;;  %s186_s6 = sand.u32 1, %s951_s16  }
  0x1a   : > { %v1077_v31 = vrot.slane %v193_v29, %v244_v26  ;;  %v1079_v34 = vrot.slane %v193_v29, %v288_v28  ;;  %v1082_v37 = vrot.slane %v193_v29, %v392_v30  ;;  %v1085_v39 = vrot.slane %v193_v29, %v340_v32  ;;  %s716_s7 = sshll.u32 %s186_s6, 1  ;;  %s640_s14 = scalar_lea.sflag [#allocation3], %s186_s6 }
  0x1b   : > { %s188_s8 = scalar_lea.vmem [#allocation2], %s716_s7 }
  0x1c   : > { %209 = vperm.xlu0 %887, %v195_v4   ;;  %879 = vset.pattern.permute.xlu1 %v963_v5  ;;  %s653_s9 = sshll.u32 %s188_s8, 4  ;;  %s1155_s9 = int_to_ptr.vmem [resolvable:$true] %s653_s9 }
  0x1d   : > { %214 = vperm.xlu1 %879, %v196_v7   ;;  %s897_s20 = scalar_lea.vmem %s1155_s9, 32  ;;  %p904_p0 = scmp.lt.s32.totalorder %s1155_s9, %s902_s22 }
  0x1e   : > { %p898_p11 = scmp.ne.s32.totalorder %s1155_s9, %s897_s20  ;;  %p905_p1 = scmp.lt.s32.totalorder %s903_s23, %s897_s20 }
  0x20   : > { %219 = vperm.xlu0 %887, %v197_v3   ;;  %p899_p12 = pnand %p898_p11, %p1032_p5  ;;  %p906_p2 = por %p905_p1, %p904_p0 }
  0x21   : > { %880 = vset.pattern.permute.xlu1 %v962_v2 }
  0x22   : > { %263 = vperm.xlu1 %880, %v196_v7   ;;  %p900_p13 = pneg %p899_p12 }
  0x24   : > { %234 = vperm.xlu0 %887, %v200_v8   ;;  %p907_p3 = pnand %p906_p2, %p900_p13 }
  0x26   : > { %267 = vperm.xlu1 %880, %v197_v3  }
  0x28   : > { %889 = vset.pattern.permute.xlu0 %v962_v2 }
  0x29   : > { %271 = vperm.xlu0 %889, %v198_v9  }
  0x2a   : > { %882 = vset.pattern.permute.xlu1 %v961_v1 }
  0x2b   : > { %363 = vperm.xlu1 %882, %v195_v4  }
  0x2d   : > { %283 = vperm.xlu0 %889, %v201_v10  }
  0x2f   : > { %883 = vset.pattern.permute.xlu1 %v964_v6 }
  0x30   : > { %315 = vperm.xlu1 %883, %v196_v7  }
  0x31   : > { %892 = vset.pattern.permute.xlu0 %v964_v6 }
  0x32   : > { %307 = vperm.xlu0 %892, %v194_v0  }
  0x34   : > { %884 = vset.pattern.permute.xlu1 %v963_v5 }
  0x35   : > { %224 = vperm.xlu1 %884, %v198_v9  }
  0x36   : > { %319 = vperm.xlu0 %892, %v197_v3  }
  0x39   : > { %229 = vperm.xlu1 %884, %v199_v11  }
  0x3a   : > { %331 = vperm.xlu0 %892, %v200_v8  }
  0x3d   : > { %885 = vset.pattern.permute.xlu1 %v962_v2 }
  0x3e   : > { %275 = vperm.xlu1 %885, %v199_v11   ;;  %896 = vset.pattern.permute.xlu0 %v961_v1 }
  0x3f   : > { %387 = vperm.xlu0 %896, %v201_v10  }
  0x42   : > { %886 = vset.pattern.permute.xlu1 %v961_v1 }
  0x43   : > { %367 = vperm.xlu1 %886, %v196_v7  }
  0x47   : > { %888 = vset.pattern.permute.xlu1 %v964_v6 }
  0x48   : > { %323 = vperm.xlu1 %888, %v198_v9  }
  0x4c   : > { %327 = vperm.xlu1 %888, %v199_v11  }
  0x50   : > { %890 = vset.pattern.permute.xlu1 %v963_v5 }
  0x51   : > { %239 = vperm.xlu1 %890, %v201_v10  }
  0x55   : > { %891 = vset.pattern.permute.xlu1 %v962_v2 }
  0x56   : > { %279 = vperm.xlu1 %891, %v200_v8  }
  0x5a   : > { %893 = vset.pattern.permute.xlu1 %v961_v1 }
  0x5b   : > { %375 = vperm.xlu1 %893, %v198_v9  }
  0x5f   : > { %379 = vperm.xlu1 %893, %v199_v11  }
  0x63   : > { %894 = vset.pattern.permute.xlu1 %v964_v6 }
  0x64   : > { %335 = vperm.xlu1 %894, %v201_v10  }
  0x68   : > { %895 = vset.pattern.permute.xlu1 %v961_v1 }
  0x69   : > { %383 = vperm.xlu1 %895, %v200_v8  }
  0x8e   : > { %v256_v13 = vpop.permute.xlu1 %255  ;;  %v360_v14 = vpop.permute.xlu0 %359 }
  0x8f   : > { %v290_v44 = vmul.f32 %v1079_v34, %v256_v13  ;;  %v394_v48 = vmul.f32 %v1082_v37, %v360_v14 }
  0x92   : > { %v260_v15 = vpop.permute.xlu1 %259  ;;  %v372_v16 = vpop.permute.xlu0 %371 }
  0x93   : > { %v291_v38 = vmul.f32 %v1079_v34, %v260_v15  ;;  %v397_v3 = vmul.f32 %v1082_v37, %v372_v16 }
  0x97   : > { %v205_v17 = vpop.permute.xlu0 %204  ;;  %v312_v18 = vpop.permute.xlu1 %311 }
  0x98   : > { %v246_v41 = vmul.f32 %v1077_v31, %v205_v17  ;;  %v343_v45 = vmul.f32 %v1085_v39, %v312_v18 }
  0x9a   : > { %v298_v49 = vadd.f32 %v290_v44, %v246_v41 }
  0x9b   : > { %v210_v19 = vpop.permute.xlu0 %209 }
  0x9c   : > { %v215_v20 = vpop.permute.xlu1 %214  ;;  %v247_v35 = vmul.f32 %v1077_v31, %v210_v19 }
  0x9d   : > { %v248_v4 = vmul.f32 %v1077_v31, %v215_v20 }
  0x9e   : > { %v299_v42 = vadd.f32 %v291_v38, %v247_v35 }
  0x9f   : > { %v220_v22 = vpop.permute.xlu0 %219 }
  0xa0   : > { %v351_v50 = vadd.f32 %v343_v45, %v299_v42  ;;  %v249_v60 = vmul.f32 %v1077_v31, %v220_v22 }
  0xa1   : > { %v264_v23 = vpop.permute.xlu1 %263 }
  0xa2   : > { %v292_v0 = vmul.f32 %v1079_v34, %v264_v23 }
  0xa3   : > { %v1072_v25 = vpop.permute.xlu0 %234 }
  0xa4   : > { %v300_v7 = vadd.f32 %v292_v0, %v248_v4  ;;  %v423_v0 = vld [vmem:[%s1202_s2 + $0x28] sm:$0xff]  ;;  %v967_v4 = vmov 0.0  }
  0xa5   : > { %v268_v27 = vpop.permute.xlu1 %267  ;;  %800 = vmatprep.mubr.msk.f32.mxu1 %vm966_vm1, %v967_v4 }
  0xa6   : > { %v293_v61 = vmul.f32 %v1079_v34, %v268_v27 }
  0xa8   : > { %v272_v33 = vpop.permute.xlu0 %271  ;;  %v301_v1 = vadd.f32 %v293_v61, %v249_v60 }
  0xa9   : > { %v294_v20 = vmul.f32 %v1079_v34, %v272_v33 }
  0xaa   : > { %v364_v36 = vpop.permute.xlu1 %363 }
  0xab   : > { %v395_v46 = vmul.f32 %v1082_v37, %v364_v36 }
  0xac   : > { %v1087_v40 = vpop.permute.xlu0 %283 }
  0xad   : > { %v403_v52 = vadd.f32 %v395_v46, %v351_v50  ;;  %v297_v42 = vmul.f32 %v1079_v34, %v1087_v40 }
  0xaf   : > { %v316_v43 = vpop.permute.xlu1 %315  ;;  %v411_v56 = vmax.f32 %v403_v52, 0.0 }
  0xb0   : > { %v344_v5 = vmul.f32 %v1085_v39, %v316_v43 }
  0xb1   : > { %v308_v47 = vpop.permute.xlu0 %307 }
  0xb2   : > { %v342_v51 = vmul.f32 %v1085_v39, %v308_v47  ;;  %v352_v9 = vadd.f32 %v344_v5, %v300_v7  ;;  %v252_v47 = vmul.f32 %v1077_v31, %v1072_v25 }
  0xb4   : > { %v350_v53 = vadd.f32 %v342_v51, %v298_v49  ;;  %v225_v54 = vpop.permute.xlu1 %224 }
  0xb5   : > { %v320_v57 = vpop.permute.xlu0 %319  ;;  %v250_v21 = vmul.f32 %v1077_v31, %v225_v54 }
  0xb6   : > { %v402_v55 = vadd.f32 %v394_v48, %v350_v53  ;;  %v345_v63 = vmul.f32 %v1085_v39, %v320_v57 }
  0xb7   : > { %v302_v26 = vadd.f32 %v294_v20, %v250_v21 }
  0xb8   : > { %v230_v58 = vpop.permute.xlu1 %229  ;;  %v410_v59 = vmax.f32 %v402_v55, 0.0  ;;  %v353_v6 = vadd.f32 %v345_v63, %v301_v1  ;;  %v422_v63 = vld [vmem:[%s1202_s2 + $0x20] sm:$0xff]  ;;  %v424_v1 = vld [vmem:[%s1202_s2 + $0x30] sm:$0xff] }
  0xb9   : > { %v251_v27 = vmul.f32 %v1077_v31, %v230_v58  ;;  %v332_v35 = vpop.permute.xlu0 %331 }
  0xba   : > { %v803_v62 = vpack.c.bf16 %v411_v56, %v410_v59  ;;  %v405_v10 = vadd.f32 %v397_v3, %v353_v6  ;;  %v348_v54 = vmul.f32 %v1085_v39, %v332_v35  ;;  %v965_v3 = vmov 0.0|0.0  }
  0xbb   : > { %819 = vmatprep.subr.bf16.mxu1 %v965_v3 }
  0xbc   : > { %804 = vmatprep.subr.bf16.mxu0 %v803_v62  ;;  %v413_v13 = vmax.f32 %v405_v10, 0.0 }
  0xbd   : > { %v276_v2 = vpop.permute.xlu1 %275  ;;  %806 = vmatpush3.bf16.msra.mxu0 %v803_v62  ;;  %v420_v62 = vld [vmem:[%s1202_s2 + $0x10] sm:$0xff] }
  0xbe   : > { %v295_v22 = vmul.f32 %v1079_v34, %v276_v2  ;;  %v388_v46 = vpop.permute.xlu0 %387  ;;  %v425_v2 = vld [vmem:[%s1202_s2 + $0x38] sm:$0xff] }
  0xbf   : > { %v401_v40 = vmul.f32 %v1082_v37, %v388_v46 }
  0xc0   : > { %v303_v30 = vadd.f32 %v295_v22, %v251_v27 }
  0xc2   : > { %v368_v8 = vpop.permute.xlu1 %367 }
  0xc3   : > { %v396_v11 = vmul.f32 %v1082_v37, %v368_v8 }
  0xc5   : > { %v404_v12 = vadd.f32 %v396_v11, %v352_v9 }
  0xc7   : > { %v412_v14 = vmax.f32 %v404_v12, 0.0  ;;  %v324_v15 = vpop.permute.xlu1 %323 }
  0xc8   : > { %v346_v23 = vmul.f32 %v1085_v39, %v324_v15 }
  0xc9   : > { %v807_v17 = vpack.c.bf16 %v413_v13, %v412_v14 }
  0xca   : > { %v354_v32 = vadd.f32 %v346_v23, %v302_v26  ;;  %v564_v26 = vld [vmem:[%s1203_s3] sm:$0x3] }
  0xcb   : > { %v328_v18 = vpop.permute.xlu1 %327  ;;  %808 = vmatprep.subr.bf16.mxu0 %v807_v17 }
  0xcc   : > { %810 = vmatpush3.bf16.msra.mxu0 %v807_v17  ;;  %v347_v28 = vmul.f32 %v1085_v39, %v328_v18 }
  0xce   : > { %v355_v38 = vadd.f32 %v347_v28, %v303_v30 }
  0xd0   : > { %v240_v16 = vpop.permute.xlu1 %239 }
  0xd1   : > { %v253_v43 = vmul.f32 %v1077_v31, %v240_v16 }
  0xd3   : > { %v305_v51 = vadd.f32 %v297_v42, %v253_v43 }
  0xd5   : > { %v280_v19 = vpop.permute.xlu1 %279 }
  0xd6   : > { %v296_v44 = vmul.f32 %v1079_v34, %v280_v19 }
  0xd8   : > { %v304_v53 = vadd.f32 %v296_v44, %v252_v47 }
  0xda   : > { %v376_v24 = vpop.permute.xlu1 %375  ;;  %v356_v57 = vadd.f32 %v348_v54, %v304_v53 }
  0xdb   : > { %v398_v29 = vmul.f32 %v1082_v37, %v376_v24 }
  0xdd   : > { %v406_v33 = vadd.f32 %v398_v29, %v354_v32 }
  0xde   : > { %v380_v36 = vpop.permute.xlu1 %379 }
  0xdf   : > { %v399_v41 = vmul.f32 %v1082_v37, %v380_v36  ;;  %v414_v48 = vmax.f32 %v406_v33, 0.0 }
  0xe1   : > { %v407_v45 = vadd.f32 %v399_v41, %v355_v38 }
  0xe3   : > { %v415_v49 = vmax.f32 %v407_v45, 0.0  ;;  %v336_v50 = vpop.permute.xlu1 %335 }
  0xe4   : > { %v349_v52 = vmul.f32 %v1085_v39, %v336_v50  ;;  %v419_v39 = vld [vmem:[%s1202_s2 + $0x8] sm:$0xff] }
  0xe5   : > { %v811_v55 = vpack.c.bf16 %v415_v49, %v414_v48 }
  0xe6   : > { %v357_v56 = vadd.f32 %v349_v52, %v305_v51 }
  0xe7   : > { %812 = vmatprep.subr.bf16.mxu0 %v811_v55 }
  0xe8   : > { %v384_v34 = vpop.permute.xlu1 %383  ;;  %814 = vmatpush3.bf16.msra.mxu0 %v811_v55  ;;  %v409_v58 = vadd.f32 %v401_v40, %v357_v56 }
  0xe9   : > { %v400_v25 = vmul.f32 %v1082_v37, %v384_v34  ;;  %v421_v37 = vld [vmem:[%s1202_s2 + $0x18] sm:$0xff] }
  0xea   : > { %v417_v59 = vmax.f32 %v409_v58, 0.0 }
  0xeb   : > { %v408_v31 = vadd.f32 %v400_v25, %v356_v57 }
  0xed   : > { %v416_v60 = vmax.f32 %v408_v31, 0.0 }
  0xef   : > { %v815_v61 = vpack.c.bf16 %v417_v59, %v416_v60 }
  0xf1   : > { %816 = vmatprep.subr.bf16.mxu0 %v815_v61 }
  0xf2   : > { %818 = vmatpush3.bf16.msra.mxu0 %v815_v61 }
  0xf5   : > { %773 = vmatmul.mubr.msk.f32.vlgmr.msra.gmra.mrb[0].mxu0 %vm426_vm0, %v419_v39 }
  0xf6   : > { %775 = vmatprep.mubr.msk.f32.mxu0 %vm426_vm0, %v420_v62 }
  0xf9   : > { %776 = vmatmul.mubr.msk.f32.gmra.mrb[2].mxu0 %vm426_vm0, %v421_v37 }
  0xfa   : > { %778 = vmatprep.mubr.msk.f32.mxu0 %vm426_vm0, %v422_v63 }
  0xfd   : > { %779 = vmatmul.mubr.msk.f32.gmra.mrb[4].mxu0 %vm426_vm0, %v423_v0 }
  0xfe   : > { %781 = vmatprep.mubr.msk.f32.mxu0 %vm426_vm0, %v424_v1 }
 0x101   : > { %782 = vmatmul.mubr.msk.f32.gmra.mrb[6].mxu0 %vm426_vm0, %v425_v2 }
 0x1c8   : > { %v774_v5 = vpop.f32.mrb[0].mxu0 }
 0x1c9   : > { %v557_v6 = vmax.f32 %v774_v5, 0.0  ;;  %v517_v7 = vpop.f32.mrb[1].mxu0 }
 0x1ca   : > { %v556_v8 = vmax.f32 %v517_v7, 0.0 }
 0x1cc   : > { %v777_v9 = vpop.f32.mrb[2].mxu0  ;;  %v820_v10 = vpack.c.bf16 %v557_v6, %v556_v8 }
 0x1cd   : > { %v559_v11 = vmax.f32 %v777_v9, 0.0  ;;  %v527_v12 = vpop.f32.mrb[3].mxu0 }
 0x1ce   : > { %v558_v13 = vmax.f32 %v527_v12, 0.0  ;;  %821 = vmatpush3.bf16.msra.mxu1 %v820_v10 }
 0x1cf   : > { %822 = vmatprep.subr.bf16.mxu1 %v965_v3 }
 0x1d0   : > { %v823_v14 = vpack.c.bf16 %v559_v11, %v558_v13  ;;  %v780_v15 = vpop.f32.mrb[4].mxu0 }
 0x1d1   : > { %v561_v17 = vmax.f32 %v780_v15, 0.0  ;;  %v537_v18 = vpop.f32.mrb[5].mxu0 }
 0x1d2   : > { %v560_v16 = vmax.f32 %v537_v18, 0.0  ;;  %824 = vmatpush3.bf16.msra.mxu1 %v823_v14 }
 0x1d3   : > { %825 = vmatprep.subr.bf16.mxu1 %v965_v3 }
 0x1d4   : > { %v826_v19 = vpack.c.bf16 %v561_v17, %v560_v16  ;;  %v783_v20 = vpop.f32.mrb[6].mxu0 }
 0x1d5   : > { %v563_v21 = vmax.f32 %v783_v20, 0.0  ;;  %v547_v22 = vpop.f32.mrb[7].mxu0 }
 0x1d6   : > { %v562_v23 = vmax.f32 %v547_v22, 0.0  ;;  %827 = vmatpush3.bf16.msra.mxu1 %v826_v19 }
 0x1d7   : > { %828 = vmatprep.subr.bf16.mxu1 %v965_v3 }
 0x1d8   : > { %v829_v24 = vpack.c.bf16 %v563_v21, %v562_v23 }
 0x1da   : > { %830 = vmatpush3.bf16.msra.mxu1 %v829_v24 }
 0x1dd   : > { %801 = vmatmul.mubr.msk.f32.vlgmr.msra.gmra.mrb[0].mxu1 %vm426_vm0, %v564_v26 }
 0x2b0   : > { %v634_v27 = vpop.f32.mrb[0].mxu1 }
 0x2b1   : > { %638 = vst [vmem:[%s188_s8] sm:$0x3] %v634_v27  ;;  %v802_v28 = vpop.f32.mrb[1].mxu1 }
 0x2b2   : > { %910 = shalt.err (!%p907_p3)
}
 0x2b3   : > { %s911_s27 = scalar_lea.hbm %s1160_s13, 32  ;;  %s915_s30 = scalar_lea.hbm %s1204_s4, 64 }
 0x2b4   : > { %p912_p4 = scmp.ne.s32.totalorder %s1160_s13, %s911_s27  ;;  %p916_p9 = scmp.lt.u32.totalorder %s1160_s13, %s1204_s4 }
 0x2b5   : > { %p917_p10 = scmp.lt.u32.totalorder %s915_s30, %s911_s27  ;;  %p919_p12 = scmp.lt.u32.totalorder %s911_s27, %s1160_s13 }
 0x2b6   : > { %p913_p7 = pnand %p912_p4, %p1032_p5 }
 0x2b7   : > { %p918_p11 = por %p917_p10, %p916_p9 }
 0x2b8   : > { %p914_p8 = pneg %p913_p7 }
 0x2b9   : > { %p920_p13 = por %p919_p12, %p918_p11 }
 0x2bb   : > { %p921_p0 = pnand %p920_p13, %p914_p8 }
 0x2bd   : > { %924 = shalt.err (!%p921_p0)
}
 0x2be   : > { %831 = dma.vmem_to_hbm [thread:$0]  (%p1032_p5), %s1155_s9, 32, %s1160_s13, %s640_s14  }
 0x2bf PF: > { %p837_p1 = scmp.ge.s32.totalorder %s959_s18, 2  ;;  %s665_s7 = sand.u32 1, %s947_s15  }
 0x2c0   : > { %s666_s8 = scalar_lea.sflag [#allocation3], %s665_s7 }
 0x2c1   : > { %p834_p2 = pnand %p837_p1, %p1036_p6 }
 0x2c3   : > { %942 = dma.done.wait (!%p834_p2), %s666_s8, 32  }
 0x2c4   : > { %944 = vsyncadd (!%p834_p2), %s666_s8, 4294967264  ;;  %p14_p3 = scmp.ge.s32.totalorder %s1019_s21, 4   ;;  %s1207_s15 = smov %s951_s16 }
 0x2c5   : > { %s1208_s16 = smov %s955_s17  ;;  %s1209_s17 = smov %s1030_s24 }
 0x2c6   : > { %s1210_s18 = smov %s1019_s21  ;;  %16 = sbr.rel (!%p14_p3) target bundleno = 3 (0x3), region = 71 }
 0x2cd   :  { %671 = vsyncpa [#allocation3], 1 }
 0x2ce   :  { %673 = vsyncpa [#allocation3 + $0x1], 1 }

</bundles_post_ra>
